<compile_context>
chip_gen: v5e
topology: v5e:2x2
jax: 0.10.0
libtpu: 0.0.40
codegen_flags: <defaults>
</compile_context>

<pallas_src>
import math

import jax
import jax.numpy as jnp
from jax.experimental import pallas as pl
from jax.experimental.pallas import tpu as pltpu

H_HEADS = 4     # MultiThreadMemory h
TOPK = 3        # MultiThreadMemory topk
MXU_LANE = 128


def _proto_fc_kernel(cf_ref, a_ref, c_ref, g_ref, wfc1_ref, bias_ref, out_ref):
    """One (TL, D) tile of flattened (batch*seq) tokens -> (TL, HID_pad)."""
    cf = cf_ref[...]                                   # (TL, D) bf16
    TL = cf.shape[0]
    M = a_ref.shape[2]
    neg = jnp.finfo(jnp.float32).min
    bf16 = jnp.bfloat16

    # hoisted out of the head loop (broadcast_in_dim is not CSE'd)
    lane = jax.lax.broadcasted_iota(jnp.int32, (TL, M), 1)

    # combined-features half of the fc layer + all folded biases
    acc = jnp.dot(cf, wfc1_ref[...], preferred_element_type=jnp.float32)
    acc = acc + bias_ref[...]                          # (TL, HID_pad)

    for h in range(H_HEADS):                           # H=4, fully unrolled
        # scores for head h over all M memory slots: one D-deep MXU matmul
        # (Wq, K and 1/sqrt(dk) are folded into a_ref / c_ref).
        s = jnp.dot(cf, a_ref[h], preferred_element_type=jnp.float32) + c_ref[h]

        # top-k (k=TOPK) via iterated first-occurrence argmax, capturing the
        # k values; softmax over the k values only (O(TL*k), not O(TL*M)).
        work = s
        vals, firsts = [], []
        for _ in range(TOPK):
            vals.append(jnp.max(work, axis=-1, keepdims=True))      # (TL, 1)
            amax = jnp.argmax(work, axis=-1, keepdims=True)          # (TL, 1)
            first = lane == amax                                     # (TL, M)
            firsts.append(first)
            work = jnp.where(first, neg, work)

        e = [jnp.exp(v - vals[0]) for v in vals[1:]]   # exp(v0 - v0) == 1
        denom = jnp.ones_like(vals[0])
        for x in e:
            denom = denom + x
        inv = pl.reciprocal(denom, approx=True)        # EUP slot, ~free

        p = jnp.where(firsts[0], inv, 0.0)
        for i in range(1, TOPK):
            p = p + jnp.where(firsts[i], e[i - 1] * inv, 0.0)        # (TL, M)

        # V rows, Wo and the response half of fc are all folded into G_h.
        acc = acc + jnp.dot(p.astype(bf16), g_ref[h],
                            preferred_element_type=jnp.float32)

    out_ref[...] = acc


def _round_up(x, m):
    return ((x + m - 1) // m) * m


def _fold_params(proto_row, params):
    """Fold prototype K/V projections, Wo, the response half of fc and all
    biases into token-independent matrices (f32):

        scores_h = (cf @ Wq_h + bq_h) @ (proto @ Wk_h + bk_h).T / sqrt(dk)
                 = cf @ A_h + c_h
        reduced  = cf @ Wfc1 + sum_h p_h @ G_h + (bfc + bo @ Wfc2)
    """
    M, D = proto_row.shape
    dk = D // H_HEADS
    scale = 1.0 / math.sqrt(dk)

    pv = proto_row.astype(jnp.float32)                       # (M, D)
    k = pv @ params["wk"] + params["bk"]                     # (M, D)
    v = pv @ params["wv"] + params["bv"]                     # (M, D)

    wq_h = params["wq"].reshape(D, H_HEADS, dk)
    bq_h = params["bq"].reshape(1, H_HEADS, dk)
    k_h = k.reshape(M, H_HEADS, dk)
    v_h = v.reshape(M, H_HEADS, dk)
    wo_h = params["wo"].reshape(H_HEADS, dk, D)

    a = jnp.einsum("dhk,mhk->hdm", wq_h, k_h) * scale        # (H, D, M)
    c = jnp.einsum("qhk,mhk->hqm", bq_h, k_h) * scale        # (H, 1, M)
    u = jnp.einsum("mhk,hkd->hmd", v_h, wo_h)                # (H, M, D)
    g = jnp.einsum("hmd,de->hme", u, params["wfc2"])         # (H, M, HID)
    bias = params["bfc"] + params["bo"] @ params["wfc2"]     # (1, HID)
    return a, c, g, bias


def vqa_prototype_forward(cf, proto, params,
                          attention_mask=None,
                          start_positions=None, end_positions=None,
                          max_tl=256):
    """Returns (loss, start_logits, end_logits) like VqaPrototypeModel.forward."""
    del attention_mask  # consumed only by the (unimplemented) external encoder
    B, L, D = cf.shape
    M = proto.shape[1]
    HID = params["wqa"].shape[0]
    assert D % H_HEADS == 0 and M >= TOPK and max_tl % 16 == 0

    bf16 = jnp.bfloat16
    hid_pad = _round_up(HID, MXU_LANE)            # lane-dense kernel output

    # Prototype memory is a batch-invariant repeat by construction; fold its
    # projections once (token- and batch-independent).
    a, c, g, bias = _fold_params(proto[0], params)
    pad_h = hid_pad - HID
    a_b = a.astype(bf16)                                           # (H, D, M)
    c_f = c.astype(jnp.float32)                                    # (H, 1, M)
    g_p = jnp.pad(g, ((0, 0), (0, 0), (0, pad_h))).astype(bf16)    # (H, M, HIDp)
    wfc1_p = jnp.pad(params["wfc1"], ((0, 0), (0, pad_h))).astype(bf16)
    bias_p = jnp.pad(bias, ((0, 0), (0, pad_h))).astype(jnp.float32)

    # Flatten (B, L) into one row axis: every token runs the same program.
    n = B * L
    if n >= max_tl:
        tl = max_tl                              # 256 for v6e/v7x; pass 128 on v5e
    else:
        tl = n if n % 16 == 0 else _round_up(n, 16)   # bf16 sublane packing
    n_pad = _round_up(n, tl)
    cf_flat = cf.reshape(n, D)
    if n_pad != n:
        cf_flat = jnp.pad(cf_flat, ((0, n_pad - n), (0, 0)))
    cf_b = cf_flat.astype(bf16)

    full = lambda nd: (lambda t: (0,) * nd)      # constant-index weight blocks

    red = pl.pallas_call(
        _proto_fc_kernel,
        out_shape=jax.ShapeDtypeStruct((n_pad, hid_pad), jnp.float32),
        grid_spec=pltpu.PrefetchScalarGridSpec(
            num_scalar_prefetch=0,
            grid=(n_pad // tl,),
            in_specs=[
                pl.BlockSpec((tl, D), lambda t: (t, 0)),           # token tile
                pl.BlockSpec((H_HEADS, D, M), full(3)),            # A = Wq·Kᵀ/√dk
                pl.BlockSpec((H_HEADS, 1, M), full(3)),            # c = bq·Kᵀ/√dk
                pl.BlockSpec((H_HEADS, M, hid_pad), full(3)),      # G = V·Wo·Wfc2
                pl.BlockSpec((D, hid_pad), full(2)),               # Wfc1 (padded)
                pl.BlockSpec((1, hid_pad), full(2)),               # bfc + bo·Wfc2
            ],
            out_specs=pl.BlockSpec((tl, hid_pad), lambda t: (t, 0)),
        ),
        compiler_params=pltpu.CompilerParams(
            dimension_semantics=("parallel",),
            # > v5e's 16 MiB scoped default, well under v7x's 64 MiB physical.
            vmem_limit_bytes=32 * 1024 * 1024),
    )(cf_b, a_b, c_f, g_p, wfc1_p, bias_p)

    red = red[:n, :HID].reshape(B, L, HID)

    # qa_outputs head in the XLA wrapper (kernel output stays lane-dense).
    logits = jnp.matmul(red, params["wqa"]) + params["bqa"]        # (B, L, 2)
    start_logits = logits[..., 0]
    end_logits = logits[..., 1]

    loss = None
    if start_positions is not None and end_positions is not None:
        ignored_index = L    # HF QA convention: clamp to [0, L], ignore == L

        def ce(lg, pos):
            pos = jnp.clip(pos, 0, ignored_index)
            valid = pos != ignored_index
            lsm = jax.nn.log_softmax(lg, axis=-1)
            safe = jnp.where(valid, pos, 0)
            nll = -jnp.take_along_axis(lsm, safe[:, None], axis=-1)[:, 0]
            nll = jnp.where(valid, nll, 0.0)
            return jnp.sum(nll) / jnp.maximum(jnp.sum(valid), 1)

        loss = 0.5 * (ce(start_logits, start_positions)
                      + ce(end_logits, end_positions))
    return loss, start_logits, end_logits


def init_params(key, d_model, hidden):
    """Deterministic PyTorch-Linear-style init; weights stored as (in, out)."""
    ks = jax.random.split(key, 12)

    def lin(kw, kb, fan_in, fan_out):
        bound = 1.0 / math.sqrt(fan_in)
        w = jax.random.uniform(kw, (fan_in, fan_out), jnp.float32, -bound, bound)
        b = jax.random.uniform(kb, (1, fan_out), jnp.float32, -bound, bound)
        return w, b

    wq, bq = lin(ks[0], ks[1], d_model, d_model)
    wk, bk = lin(ks[2], ks[3], d_model, d_model)
    wv, bv = lin(ks[4], ks[5], d_model, d_model)
    wo, bo = lin(ks[6], ks[7], d_model, d_model)
    wfc, bfc = lin(ks[8], ks[9], 2 * d_model, hidden)
    wqa, bqa = lin(ks[10], ks[11], hidden, 2)
    return dict(wq=wq, bq=bq, wk=wk, bk=bk, wv=wv, bv=bv, wo=wo, bo=bo,
                wfc1=wfc[:d_model], wfc2=wfc[d_model:], bfc=bfc,
                wqa=wqa, bqa=bqa)


def reference_logits(cf, proto, params):
    """Pure-JAX reference mirroring the PyTorch forward (eval mode).

    Scores use the same folded, bf16-cast A/c the kernel uses (so the discrete
    top-k selection is anchored); everything downstream (topk, gather, softmax,
    Wo, fc, qa head) follows the torch code in f32.
    """
    B, L, D = cf.shape
    M = proto.shape[1]
    dk = D // H_HEADS

    a, c, _, _ = _fold_params(proto[0], params)
    s = jnp.einsum("bld,hdm->bhlm", cf.astype(jnp.bfloat16),
                   a.astype(jnp.bfloat16),
                   preferred_element_type=jnp.float32) + c[None]

    vals, idx = jax.lax.top_k(s, TOPK)                         # (B,H,L,K)
    p = jax.nn.softmax(vals, axis=-1)

    v = proto.astype(jnp.float32) @ params["wv"] + params["bv"]      # (B, M, D)
    v_h = v.reshape(B, M, H_HEADS, dk).transpose(0, 2, 1, 3)         # (B,H,M,dk)
    dummy_v = jnp.broadcast_to(v_h[:, :, None], (B, H_HEADS, L, M, dk))
    dummy_i = jnp.broadcast_to(idx[..., None], (B, H_HEADS, L, TOPK, dk))
    sel_v = jnp.take_along_axis(dummy_v, dummy_i, axis=3)            # (B,H,L,K,dk)
    x = jnp.einsum("bhlk,bhlkd->bhld", p, sel_v)
    x = x.transpose(0, 2, 1, 3).reshape(B, L, D)
    resp = x @ params["wo"] + params["bo"]
    red = cf @ params["wfc1"] + resp @ params["wfc2"] + params["bfc"]
    return red @ params["wqa"] + params["bqa"]


if __name__ == "__main__":
    key = jax.random.PRNGKey(0)
    B, L = 2, 8            # batch_size, seq_length
    HIDDEN = 16            # qamodel.qa_outputs.in_features
    IMG_FEAT = 8           # image_features
    D = HIDDEN + 2 * IMG_FEAT       # d_model = 32, divisible by h=4
    P = 2                  # raw prototype vectors

    k_cf, k_pv, k_par = jax.random.split(key, 3)
    combined_features = jax.random.normal(k_cf, (B, L, D), jnp.float32)
    prototype_vectors = jax.random.normal(k_pv, (1, P, D), jnp.float32)
    # torch: prototype_vectors.repeat(batch_size, seq_length, 1) -> (B, P*L, D)
    prototype_memory = jnp.tile(prototype_vectors, (B, L, 1))
    attention_mask = jnp.ones((B, L), jnp.int32)
    start_positions = jnp.array([1, 3], jnp.int32)
    end_positions = jnp.array([4, 6], jnp.int32)

    params = init_params(k_par, D, HIDDEN)

    loss, start_logits, end_logits = vqa_prototype_forward(
        combined_features, prototype_memory, params,
        attention_mask=attention_mask,
        start_positions=start_positions, end_positions=end_positions)
    jax.block_until_ready((loss, start_logits, end_logits))

    # 1) smooth (non-discrete) check of the score-folding algebra
    M = prototype_memory.shape[1]
    q = combined_features @ params["wq"] + params["bq"]
    qh = q.reshape(B, L, H_HEADS, D // H_HEADS).transpose(0, 2, 1, 3)
    kk = prototype_memory @ params["wk"] + params["bk"]
    kh = kk.reshape(B, M, H_HEADS, D // H_HEADS).transpose(0, 2, 1, 3)
    s_torch = jnp.einsum("bhld,bhmd->bhlm", qh, kh) / math.sqrt(D // H_HEADS)
    a_f, c_f, _, _ = _fold_params(prototype_memory[0], params)
    s_fold = jnp.einsum("bld,hdm->bhlm", combined_features, a_f) + c_f[None]
    assert jnp.allclose(s_fold, s_torch, atol=2e-2, rtol=2e-2)

    # 2) end-to-end check against the torch-faithful reference
    ref = reference_logits(combined_features, prototype_memory, params)
    assert jnp.allclose(start_logits, ref[..., 0], atol=2e-2, rtol=2e-2)
    assert jnp.allclose(end_logits, ref[..., 1], atol=2e-2, rtol=2e-2)
    assert jnp.isfinite(loss)

    print("KERNEL_OK")
</pallas_src>

<mosaic_0001>
module attributes {stable_mosaic.version = 11 : i64} {
  func.func @_proto_fc_kernel(%arg0: i32, %arg1: memref<16x32xbf16, #tpu.memory_space<vmem>>, %arg2: memref<4x32x16xbf16, #tpu.memory_space<vmem>>, %arg3: memref<4x1x16xf32, #tpu.memory_space<vmem>>, %arg4: memref<4x16x128xbf16, #tpu.memory_space<vmem>>, %arg5: memref<32x128xbf16, #tpu.memory_space<vmem>>, %arg6: memref<1x128xf32, #tpu.memory_space<vmem>>, %arg7: memref<16x128xf32, #tpu.memory_space<vmem>>) attributes {dimension_semantics = [#tpu.dimension_semantics<parallel>], iteration_bounds = array<i64: 1>, scalar_prefetch = 0 : i64, scratch_operands = 0 : i64, tpu.core_type = #tpu.core_type<tc>, window_params = [{transform_indices = @transform_0, window_bounds = array<i64: 16, 32>}, {pipeline_mode = #tpu.pipeline_mode<synchronous>, transform_indices = @transform_1, window_bounds = array<i64: 4, 32, 16>}, {pipeline_mode = #tpu.pipeline_mode<synchronous>, transform_indices = @transform_2, window_bounds = array<i64: 4, 1, 16>}, {pipeline_mode = #tpu.pipeline_mode<synchronous>, transform_indices = @transform_3, window_bounds = array<i64: 4, 16, 128>}, {pipeline_mode = #tpu.pipeline_mode<synchronous>, transform_indices = @transform_4, window_bounds = array<i64: 32, 128>}, {pipeline_mode = #tpu.pipeline_mode<synchronous>, transform_indices = @transform_5, window_bounds = array<i64: 1, 128>}, {transform_indices = @transform_6, window_bounds = array<i64: 16, 128>}]} {
    %c0 = arith.constant 0 : index
    %c0_0 = arith.constant 0 : index
    %0 = vector.load %arg1[%c0, %c0_0] : memref<16x32xbf16, #tpu.memory_space<vmem>>, vector<16x32xbf16>
    %1 = tpu.iota {dimensions = array<i32: 1>} : vector<16x16xi32>
    %c0_1 = arith.constant 0 : index
    %c0_2 = arith.constant 0 : index
    %2 = vector.load %arg5[%c0_1, %c0_2] : memref<32x128xbf16, #tpu.memory_space<vmem>>, vector<32x128xbf16>
    %cst = arith.constant dense<0.000000e+00> : vector<16x128xf32>
    %3 = tpu.matmul %0, %2, %cst {dimension_numbers = #tpu.dot_dimension_numbers<[1], [0], [0], [1], [0, 0, 1, 1], [], []>} : vector<16x32xbf16>, vector<32x128xbf16>, vector<16x128xf32> -> vector<16x128xf32>
    %c0_3 = arith.constant 0 : index
    %c0_4 = arith.constant 0 : index
    %4 = vector.load %arg6[%c0_3, %c0_4] : memref<1x128xf32, #tpu.memory_space<vmem>>, vector<1x128xf32>
    %5 = vector.broadcast %4 : vector<1x128xf32> to vector<16x128xf32>
    %6 = arith.addf %3, %5 : vector<16x128xf32>
    %c0_5 = arith.constant 0 : index
    %c0_6 = arith.constant 0 : index
    %c0_7 = arith.constant 0 : index
    %7 = vector.load %arg2[%c0_5, %c0_6, %c0_7] : memref<4x32x16xbf16, #tpu.memory_space<vmem>>, vector<1x32x16xbf16>
    %8 = vector.shape_cast %7 : vector<1x32x16xbf16> to vector<32x16xbf16>
    %cst_8 = arith.constant dense<0.000000e+00> : vector<16x16xf32>
    %9 = tpu.matmul %0, %8, %cst_8 {dimension_numbers = #tpu.dot_dimension_numbers<[1], [0], [0], [1], [0, 0, 1, 1], [], []>} : vector<16x32xbf16>, vector<32x16xbf16>, vector<16x16xf32> -> vector<16x16xf32>
    %c0_9 = arith.constant 0 : index
    %c0_10 = arith.constant 0 : index
    %c0_11 = arith.constant 0 : index
    %10 = vector.load %arg3[%c0_9, %c0_10, %c0_11] : memref<4x1x16xf32, #tpu.memory_space<vmem>>, vector<1x1x16xf32>
    %11 = vector.shape_cast %10 : vector<1x1x16xf32> to vector<1x16xf32>
    %12 = vector.broadcast %11 : vector<1x16xf32> to vector<16x16xf32>
    %13 = arith.addf %9, %12 : vector<16x16xf32>
    %cst_12 = arith.constant dense<0xFF800000> : vector<16xf32>
    %14 = vector.multi_reduction <maximumf>, %13, %cst_12 [1] : vector<16x16xf32> to vector<16xf32>
    %15 = vector.shape_cast %14 : vector<16xf32> to vector<16x1xf32>
    %16 = tpu.reduce_index %13 {axis = 1 : i32, kind = #tpu.reduction_kind<arg_max>} : vector<16x16xf32> -> vector<16xi32>
    %17 = vector.shape_cast %16 : vector<16xi32> to vector<16x1xi32>
    %18 = vector.broadcast %17 : vector<16x1xi32> to vector<16x16xi32>
    %19 = arith.cmpi eq, %1, %18 : vector<16x16xi32>
    %cst_13 = arith.constant -3.40282347E+38 : f32
    %20 = vector.broadcast %cst_13 : f32 to vector<16x16xf32>
    %21 = arith.select %19, %20, %13 : vector<16x16xi1>, vector<16x16xf32>
    %cst_14 = arith.constant dense<0xFF800000> : vector<16xf32>
    %22 = vector.multi_reduction <maximumf>, %21, %cst_14 [1] : vector<16x16xf32> to vector<16xf32>
    %23 = vector.shape_cast %22 : vector<16xf32> to vector<16x1xf32>
    %24 = tpu.reduce_index %21 {axis = 1 : i32, kind = #tpu.reduction_kind<arg_max>} : vector<16x16xf32> -> vector<16xi32>
    %25 = vector.shape_cast %24 : vector<16xi32> to vector<16x1xi32>
    %26 = vector.broadcast %25 : vector<16x1xi32> to vector<16x16xi32>
    %27 = arith.cmpi eq, %1, %26 : vector<16x16xi32>
    %cst_15 = arith.constant -3.40282347E+38 : f32
    %28 = vector.broadcast %cst_15 : f32 to vector<16x16xf32>
    %29 = arith.select %27, %28, %21 : vector<16x16xi1>, vector<16x16xf32>
    %cst_16 = arith.constant dense<0xFF800000> : vector<16xf32>
    %30 = vector.multi_reduction <maximumf>, %29, %cst_16 [1] : vector<16x16xf32> to vector<16xf32>
    %31 = vector.shape_cast %30 : vector<16xf32> to vector<16x1xf32>
    %32 = tpu.reduce_index %29 {axis = 1 : i32, kind = #tpu.reduction_kind<arg_max>} : vector<16x16xf32> -> vector<16xi32>
    %33 = vector.shape_cast %32 : vector<16xi32> to vector<16x1xi32>
    %34 = vector.broadcast %33 : vector<16x1xi32> to vector<16x16xi32>
    %35 = arith.cmpi eq, %1, %34 : vector<16x16xi32>
    %36 = arith.subf %23, %15 : vector<16x1xf32>
    %37 = math.exp %36 : vector<16x1xf32>
    %38 = arith.subf %31, %15 : vector<16x1xf32>
    %39 = math.exp %38 : vector<16x1xf32>
    %cst_17 = arith.constant 1.000000e+00 : f32
    %40 = vector.broadcast %cst_17 : f32 to vector<16x1xf32>
    %41 = arith.addf %40, %37 : vector<16x1xf32>
    %42 = arith.addf %41, %39 : vector<16x1xf32>
    %43 = tpu.reciprocal %42 {approx = true} : vector<16x1xf32> -> vector<16x1xf32>
    %cst_18 = arith.constant 0.000000e+00 : f32
    %44 = vector.shape_cast %43 : vector<16x1xf32> to vector<16x1xf32>
    %45 = vector.broadcast %44 : vector<16x1xf32> to vector<16x16xf32>
    %46 = vector.broadcast %cst_18 : f32 to vector<16x16xf32>
    %47 = arith.select %19, %45, %46 : vector<16x16xi1>, vector<16x16xf32>
    %48 = arith.mulf %37, %43 : vector<16x1xf32>
    %cst_19 = arith.constant 0.000000e+00 : f32
    %49 = vector.shape_cast %48 : vector<16x1xf32> to vector<16x1xf32>
    %50 = vector.broadcast %49 : vector<16x1xf32> to vector<16x16xf32>
    %51 = vector.broadcast %cst_19 : f32 to vector<16x16xf32>
    %52 = arith.select %27, %50, %51 : vector<16x16xi1>, vector<16x16xf32>
    %53 = arith.addf %47, %52 : vector<16x16xf32>
    %54 = arith.mulf %39, %43 : vector<16x1xf32>
    %cst_20 = arith.constant 0.000000e+00 : f32
    %55 = vector.shape_cast %54 : vector<16x1xf32> to vector<16x1xf32>
    %56 = vector.broadcast %55 : vector<16x1xf32> to vector<16x16xf32>
    %57 = vector.broadcast %cst_20 : f32 to vector<16x16xf32>
    %58 = arith.select %35, %56, %57 : vector<16x16xi1>, vector<16x16xf32>
    %59 = arith.addf %53, %58 : vector<16x16xf32>
    %60 = arith.truncf %59 : vector<16x16xf32> to vector<16x16xbf16>
    %c0_21 = arith.constant 0 : index
    %c0_22 = arith.constant 0 : index
    %c0_23 = arith.constant 0 : index
    %61 = vector.load %arg4[%c0_21, %c0_22, %c0_23] : memref<4x16x128xbf16, #tpu.memory_space<vmem>>, vector<1x16x128xbf16>
    %62 = vector.shape_cast %61 : vector<1x16x128xbf16> to vector<16x128xbf16>
    %cst_24 = arith.constant dense<0.000000e+00> : vector<16x128xf32>
    %63 = tpu.matmul %60, %62, %cst_24 {dimension_numbers = #tpu.dot_dimension_numbers<[1], [0], [0], [1], [0, 0, 1, 1], [], []>} : vector<16x16xbf16>, vector<16x128xbf16>, vector<16x128xf32> -> vector<16x128xf32>
    %64 = arith.addf %6, %63 : vector<16x128xf32>
    %c1 = arith.constant 1 : index
    %c0_25 = arith.constant 0 : index
    %c0_26 = arith.constant 0 : index
    %65 = vector.load %arg2[%c1, %c0_25, %c0_26] : memref<4x32x16xbf16, #tpu.memory_space<vmem>>, vector<1x32x16xbf16>
    %66 = vector.shape_cast %65 : vector<1x32x16xbf16> to vector<32x16xbf16>
    %cst_27 = arith.constant dense<0.000000e+00> : vector<16x16xf32>
    %67 = tpu.matmul %0, %66, %cst_27 {dimension_numbers = #tpu.dot_dimension_numbers<[1], [0], [0], [1], [0, 0, 1, 1], [], []>} : vector<16x32xbf16>, vector<32x16xbf16>, vector<16x16xf32> -> vector<16x16xf32>
    %c1_28 = arith.constant 1 : index
    %c0_29 = arith.constant 0 : index
    %c0_30 = arith.constant 0 : index
    %68 = vector.load %arg3[%c1_28, %c0_29, %c0_30] : memref<4x1x16xf32, #tpu.memory_space<vmem>>, vector<1x1x16xf32>
    %69 = vector.shape_cast %68 : vector<1x1x16xf32> to vector<1x16xf32>
    %70 = vector.broadcast %69 : vector<1x16xf32> to vector<16x16xf32>
    %71 = arith.addf %67, %70 : vector<16x16xf32>
    %cst_31 = arith.constant dense<0xFF800000> : vector<16xf32>
    %72 = vector.multi_reduction <maximumf>, %71, %cst_31 [1] : vector<16x16xf32> to vector<16xf32>
    %73 = vector.shape_cast %72 : vector<16xf32> to vector<16x1xf32>
    %74 = tpu.reduce_index %71 {axis = 1 : i32, kind = #tpu.reduction_kind<arg_max>} : vector<16x16xf32> -> vector<16xi32>
    %75 = vector.shape_cast %74 : vector<16xi32> to vector<16x1xi32>
    %76 = vector.broadcast %75 : vector<16x1xi32> to vector<16x16xi32>
    %77 = arith.cmpi eq, %1, %76 : vector<16x16xi32>
    %cst_32 = arith.constant -3.40282347E+38 : f32
    %78 = vector.broadcast %cst_32 : f32 to vector<16x16xf32>
    %79 = arith.select %77, %78, %71 : vector<16x16xi1>, vector<16x16xf32>
    %cst_33 = arith.constant dense<0xFF800000> : vector<16xf32>
    %80 = vector.multi_reduction <maximumf>, %79, %cst_33 [1] : vector<16x16xf32> to vector<16xf32>
    %81 = vector.shape_cast %80 : vector<16xf32> to vector<16x1xf32>
    %82 = tpu.reduce_index %79 {axis = 1 : i32, kind = #tpu.reduction_kind<arg_max>} : vector<16x16xf32> -> vector<16xi32>
    %83 = vector.shape_cast %82 : vector<16xi32> to vector<16x1xi32>
    %84 = vector.broadcast %83 : vector<16x1xi32> to vector<16x16xi32>
    %85 = arith.cmpi eq, %1, %84 : vector<16x16xi32>
    %cst_34 = arith.constant -3.40282347E+38 : f32
    %86 = vector.broadcast %cst_34 : f32 to vector<16x16xf32>
    %87 = arith.select %85, %86, %79 : vector<16x16xi1>, vector<16x16xf32>
    %cst_35 = arith.constant dense<0xFF800000> : vector<16xf32>
    %88 = vector.multi_reduction <maximumf>, %87, %cst_35 [1] : vector<16x16xf32> to vector<16xf32>
    %89 = vector.shape_cast %88 : vector<16xf32> to vector<16x1xf32>
    %90 = tpu.reduce_index %87 {axis = 1 : i32, kind = #tpu.reduction_kind<arg_max>} : vector<16x16xf32> -> vector<16xi32>
    %91 = vector.shape_cast %90 : vector<16xi32> to vector<16x1xi32>
    %92 = vector.broadcast %91 : vector<16x1xi32> to vector<16x16xi32>
    %93 = arith.cmpi eq, %1, %92 : vector<16x16xi32>
    %94 = arith.subf %81, %73 : vector<16x1xf32>
    %95 = math.exp %94 : vector<16x1xf32>
    %96 = arith.subf %89, %73 : vector<16x1xf32>
    %97 = math.exp %96 : vector<16x1xf32>
    %cst_36 = arith.constant 1.000000e+00 : f32
    %98 = vector.broadcast %cst_36 : f32 to vector<16x1xf32>
    %99 = arith.addf %98, %95 : vector<16x1xf32>
    %100 = arith.addf %99, %97 : vector<16x1xf32>
    %101 = tpu.reciprocal %100 {approx = true} : vector<16x1xf32> -> vector<16x1xf32>
    %cst_37 = arith.constant 0.000000e+00 : f32
    %102 = vector.shape_cast %101 : vector<16x1xf32> to vector<16x1xf32>
    %103 = vector.broadcast %102 : vector<16x1xf32> to vector<16x16xf32>
    %104 = vector.broadcast %cst_37 : f32 to vector<16x16xf32>
    %105 = arith.select %77, %103, %104 : vector<16x16xi1>, vector<16x16xf32>
    %106 = arith.mulf %95, %101 : vector<16x1xf32>
    %cst_38 = arith.constant 0.000000e+00 : f32
    %107 = vector.shape_cast %106 : vector<16x1xf32> to vector<16x1xf32>
    %108 = vector.broadcast %107 : vector<16x1xf32> to vector<16x16xf32>
    %109 = vector.broadcast %cst_38 : f32 to vector<16x16xf32>
    %110 = arith.select %85, %108, %109 : vector<16x16xi1>, vector<16x16xf32>
    %111 = arith.addf %105, %110 : vector<16x16xf32>
    %112 = arith.mulf %97, %101 : vector<16x1xf32>
    %cst_39 = arith.constant 0.000000e+00 : f32
    %113 = vector.shape_cast %112 : vector<16x1xf32> to vector<16x1xf32>
    %114 = vector.broadcast %113 : vector<16x1xf32> to vector<16x16xf32>
    %115 = vector.broadcast %cst_39 : f32 to vector<16x16xf32>
    %116 = arith.select %93, %114, %115 : vector<16x16xi1>, vector<16x16xf32>
    %117 = arith.addf %111, %116 : vector<16x16xf32>
    %118 = arith.truncf %117 : vector<16x16xf32> to vector<16x16xbf16>
    %c1_40 = arith.constant 1 : index
    %c0_41 = arith.constant 0 : index
    %c0_42 = arith.constant 0 : index
    %119 = vector.load %arg4[%c1_40, %c0_41, %c0_42] : memref<4x16x128xbf16, #tpu.memory_space<vmem>>, vector<1x16x128xbf16>
    %120 = vector.shape_cast %119 : vector<1x16x128xbf16> to vector<16x128xbf16>
    %cst_43 = arith.constant dense<0.000000e+00> : vector<16x128xf32>
    %121 = tpu.matmul %118, %120, %cst_43 {dimension_numbers = #tpu.dot_dimension_numbers<[1], [0], [0], [1], [0, 0, 1, 1], [], []>} : vector<16x16xbf16>, vector<16x128xbf16>, vector<16x128xf32> -> vector<16x128xf32>
    %122 = arith.addf %64, %121 : vector<16x128xf32>
    %c2 = arith.constant 2 : index
    %c0_44 = arith.constant 0 : index
    %c0_45 = arith.constant 0 : index
    %123 = vector.load %arg2[%c2, %c0_44, %c0_45] : memref<4x32x16xbf16, #tpu.memory_space<vmem>>, vector<1x32x16xbf16>
    %124 = vector.shape_cast %123 : vector<1x32x16xbf16> to vector<32x16xbf16>
    %cst_46 = arith.constant dense<0.000000e+00> : vector<16x16xf32>
    %125 = tpu.matmul %0, %124, %cst_46 {dimension_numbers = #tpu.dot_dimension_numbers<[1], [0], [0], [1], [0, 0, 1, 1], [], []>} : vector<16x32xbf16>, vector<32x16xbf16>, vector<16x16xf32> -> vector<16x16xf32>
    %c2_47 = arith.constant 2 : index
    %c0_48 = arith.constant 0 : index
    %c0_49 = arith.constant 0 : index
    %126 = vector.load %arg3[%c2_47, %c0_48, %c0_49] : memref<4x1x16xf32, #tpu.memory_space<vmem>>, vector<1x1x16xf32>
    %127 = vector.shape_cast %126 : vector<1x1x16xf32> to vector<1x16xf32>
    %128 = vector.broadcast %127 : vector<1x16xf32> to vector<16x16xf32>
    %129 = arith.addf %125, %128 : vector<16x16xf32>
    %cst_50 = arith.constant dense<0xFF800000> : vector<16xf32>
    %130 = vector.multi_reduction <maximumf>, %129, %cst_50 [1] : vector<16x16xf32> to vector<16xf32>
    %131 = vector.shape_cast %130 : vector<16xf32> to vector<16x1xf32>
    %132 = tpu.reduce_index %129 {axis = 1 : i32, kind = #tpu.reduction_kind<arg_max>} : vector<16x16xf32> -> vector<16xi32>
    %133 = vector.shape_cast %132 : vector<16xi32> to vector<16x1xi32>
    %134 = vector.broadcast %133 : vector<16x1xi32> to vector<16x16xi32>
    %135 = arith.cmpi eq, %1, %134 : vector<16x16xi32>
    %cst_51 = arith.constant -3.40282347E+38 : f32
    %136 = vector.broadcast %cst_51 : f32 to vector<16x16xf32>
    %137 = arith.select %135, %136, %129 : vector<16x16xi1>, vector<16x16xf32>
    %cst_52 = arith.constant dense<0xFF800000> : vector<16xf32>
    %138 = vector.multi_reduction <maximumf>, %137, %cst_52 [1] : vector<16x16xf32> to vector<16xf32>
    %139 = vector.shape_cast %138 : vector<16xf32> to vector<16x1xf32>
    %140 = tpu.reduce_index %137 {axis = 1 : i32, kind = #tpu.reduction_kind<arg_max>} : vector<16x16xf32> -> vector<16xi32>
    %141 = vector.shape_cast %140 : vector<16xi32> to vector<16x1xi32>
    %142 = vector.broadcast %141 : vector<16x1xi32> to vector<16x16xi32>
    %143 = arith.cmpi eq, %1, %142 : vector<16x16xi32>
    %cst_53 = arith.constant -3.40282347E+38 : f32
    %144 = vector.broadcast %cst_53 : f32 to vector<16x16xf32>
    %145 = arith.select %143, %144, %137 : vector<16x16xi1>, vector<16x16xf32>
    %cst_54 = arith.constant dense<0xFF800000> : vector<16xf32>
    %146 = vector.multi_reduction <maximumf>, %145, %cst_54 [1] : vector<16x16xf32> to vector<16xf32>
    %147 = vector.shape_cast %146 : vector<16xf32> to vector<16x1xf32>
    %148 = tpu.reduce_index %145 {axis = 1 : i32, kind = #tpu.reduction_kind<arg_max>} : vector<16x16xf32> -> vector<16xi32>
    %149 = vector.shape_cast %148 : vector<16xi32> to vector<16x1xi32>
    %150 = vector.broadcast %149 : vector<16x1xi32> to vector<16x16xi32>
    %151 = arith.cmpi eq, %1, %150 : vector<16x16xi32>
    %152 = arith.subf %139, %131 : vector<16x1xf32>
    %153 = math.exp %152 : vector<16x1xf32>
    %154 = arith.subf %147, %131 : vector<16x1xf32>
    %155 = math.exp %154 : vector<16x1xf32>
    %cst_55 = arith.constant 1.000000e+00 : f32
    %156 = vector.broadcast %cst_55 : f32 to vector<16x1xf32>
    %157 = arith.addf %156, %153 : vector<16x1xf32>
    %158 = arith.addf %157, %155 : vector<16x1xf32>
    %159 = tpu.reciprocal %158 {approx = true} : vector<16x1xf32> -> vector<16x1xf32>
    %cst_56 = arith.constant 0.000000e+00 : f32
    %160 = vector.shape_cast %159 : vector<16x1xf32> to vector<16x1xf32>
    %161 = vector.broadcast %160 : vector<16x1xf32> to vector<16x16xf32>
    %162 = vector.broadcast %cst_56 : f32 to vector<16x16xf32>
    %163 = arith.select %135, %161, %162 : vector<16x16xi1>, vector<16x16xf32>
    %164 = arith.mulf %153, %159 : vector<16x1xf32>
    %cst_57 = arith.constant 0.000000e+00 : f32
    %165 = vector.shape_cast %164 : vector<16x1xf32> to vector<16x1xf32>
    %166 = vector.broadcast %165 : vector<16x1xf32> to vector<16x16xf32>
    %167 = vector.broadcast %cst_57 : f32 to vector<16x16xf32>
    %168 = arith.select %143, %166, %167 : vector<16x16xi1>, vector<16x16xf32>
    %169 = arith.addf %163, %168 : vector<16x16xf32>
    %170 = arith.mulf %155, %159 : vector<16x1xf32>
    %cst_58 = arith.constant 0.000000e+00 : f32
    %171 = vector.shape_cast %170 : vector<16x1xf32> to vector<16x1xf32>
    %172 = vector.broadcast %171 : vector<16x1xf32> to vector<16x16xf32>
    %173 = vector.broadcast %cst_58 : f32 to vector<16x16xf32>
    %174 = arith.select %151, %172, %173 : vector<16x16xi1>, vector<16x16xf32>
    %175 = arith.addf %169, %174 : vector<16x16xf32>
    %176 = arith.truncf %175 : vector<16x16xf32> to vector<16x16xbf16>
    %c2_59 = arith.constant 2 : index
    %c0_60 = arith.constant 0 : index
    %c0_61 = arith.constant 0 : index
    %177 = vector.load %arg4[%c2_59, %c0_60, %c0_61] : memref<4x16x128xbf16, #tpu.memory_space<vmem>>, vector<1x16x128xbf16>
    %178 = vector.shape_cast %177 : vector<1x16x128xbf16> to vector<16x128xbf16>
    %cst_62 = arith.constant dense<0.000000e+00> : vector<16x128xf32>
    %179 = tpu.matmul %176, %178, %cst_62 {dimension_numbers = #tpu.dot_dimension_numbers<[1], [0], [0], [1], [0, 0, 1, 1], [], []>} : vector<16x16xbf16>, vector<16x128xbf16>, vector<16x128xf32> -> vector<16x128xf32>
    %180 = arith.addf %122, %179 : vector<16x128xf32>
    %c3 = arith.constant 3 : index
    %c0_63 = arith.constant 0 : index
    %c0_64 = arith.constant 0 : index
    %181 = vector.load %arg2[%c3, %c0_63, %c0_64] : memref<4x32x16xbf16, #tpu.memory_space<vmem>>, vector<1x32x16xbf16>
    %182 = vector.shape_cast %181 : vector<1x32x16xbf16> to vector<32x16xbf16>
    %cst_65 = arith.constant dense<0.000000e+00> : vector<16x16xf32>
    %183 = tpu.matmul %0, %182, %cst_65 {dimension_numbers = #tpu.dot_dimension_numbers<[1], [0], [0], [1], [0, 0, 1, 1], [], []>} : vector<16x32xbf16>, vector<32x16xbf16>, vector<16x16xf32> -> vector<16x16xf32>
    %c3_66 = arith.constant 3 : index
    %c0_67 = arith.constant 0 : index
    %c0_68 = arith.constant 0 : index
    %184 = vector.load %arg3[%c3_66, %c0_67, %c0_68] : memref<4x1x16xf32, #tpu.memory_space<vmem>>, vector<1x1x16xf32>
    %185 = vector.shape_cast %184 : vector<1x1x16xf32> to vector<1x16xf32>
    %186 = vector.broadcast %185 : vector<1x16xf32> to vector<16x16xf32>
    %187 = arith.addf %183, %186 : vector<16x16xf32>
    %cst_69 = arith.constant dense<0xFF800000> : vector<16xf32>
    %188 = vector.multi_reduction <maximumf>, %187, %cst_69 [1] : vector<16x16xf32> to vector<16xf32>
    %189 = vector.shape_cast %188 : vector<16xf32> to vector<16x1xf32>
    %190 = tpu.reduce_index %187 {axis = 1 : i32, kind = #tpu.reduction_kind<arg_max>} : vector<16x16xf32> -> vector<16xi32>
    %191 = vector.shape_cast %190 : vector<16xi32> to vector<16x1xi32>
    %192 = vector.broadcast %191 : vector<16x1xi32> to vector<16x16xi32>
    %193 = arith.cmpi eq, %1, %192 : vector<16x16xi32>
    %cst_70 = arith.constant -3.40282347E+38 : f32
    %194 = vector.broadcast %cst_70 : f32 to vector<16x16xf32>
    %195 = arith.select %193, %194, %187 : vector<16x16xi1>, vector<16x16xf32>
    %cst_71 = arith.constant dense<0xFF800000> : vector<16xf32>
    %196 = vector.multi_reduction <maximumf>, %195, %cst_71 [1] : vector<16x16xf32> to vector<16xf32>
    %197 = vector.shape_cast %196 : vector<16xf32> to vector<16x1xf32>
    %198 = tpu.reduce_index %195 {axis = 1 : i32, kind = #tpu.reduction_kind<arg_max>} : vector<16x16xf32> -> vector<16xi32>
    %199 = vector.shape_cast %198 : vector<16xi32> to vector<16x1xi32>
    %200 = vector.broadcast %199 : vector<16x1xi32> to vector<16x16xi32>
    %201 = arith.cmpi eq, %1, %200 : vector<16x16xi32>
    %cst_72 = arith.constant -3.40282347E+38 : f32
    %202 = vector.broadcast %cst_72 : f32 to vector<16x16xf32>
    %203 = arith.select %201, %202, %195 : vector<16x16xi1>, vector<16x16xf32>
    %cst_73 = arith.constant dense<0xFF800000> : vector<16xf32>
    %204 = vector.multi_reduction <maximumf>, %203, %cst_73 [1] : vector<16x16xf32> to vector<16xf32>
    %205 = vector.shape_cast %204 : vector<16xf32> to vector<16x1xf32>
    %206 = tpu.reduce_index %203 {axis = 1 : i32, kind = #tpu.reduction_kind<arg_max>} : vector<16x16xf32> -> vector<16xi32>
    %207 = vector.shape_cast %206 : vector<16xi32> to vector<16x1xi32>
    %208 = vector.broadcast %207 : vector<16x1xi32> to vector<16x16xi32>
    %209 = arith.cmpi eq, %1, %208 : vector<16x16xi32>
    %210 = arith.subf %197, %189 : vector<16x1xf32>
    %211 = math.exp %210 : vector<16x1xf32>
    %212 = arith.subf %205, %189 : vector<16x1xf32>
    %213 = math.exp %212 : vector<16x1xf32>
    %cst_74 = arith.constant 1.000000e+00 : f32
    %214 = vector.broadcast %cst_74 : f32 to vector<16x1xf32>
    %215 = arith.addf %214, %211 : vector<16x1xf32>
    %216 = arith.addf %215, %213 : vector<16x1xf32>
    %217 = tpu.reciprocal %216 {approx = true} : vector<16x1xf32> -> vector<16x1xf32>
    %cst_75 = arith.constant 0.000000e+00 : f32
    %218 = vector.shape_cast %217 : vector<16x1xf32> to vector<16x1xf32>
    %219 = vector.broadcast %218 : vector<16x1xf32> to vector<16x16xf32>
    %220 = vector.broadcast %cst_75 : f32 to vector<16x16xf32>
    %221 = arith.select %193, %219, %220 : vector<16x16xi1>, vector<16x16xf32>
    %222 = arith.mulf %211, %217 : vector<16x1xf32>
    %cst_76 = arith.constant 0.000000e+00 : f32
    %223 = vector.shape_cast %222 : vector<16x1xf32> to vector<16x1xf32>
    %224 = vector.broadcast %223 : vector<16x1xf32> to vector<16x16xf32>
    %225 = vector.broadcast %cst_76 : f32 to vector<16x16xf32>
    %226 = arith.select %201, %224, %225 : vector<16x16xi1>, vector<16x16xf32>
    %227 = arith.addf %221, %226 : vector<16x16xf32>
    %228 = arith.mulf %213, %217 : vector<16x1xf32>
    %cst_77 = arith.constant 0.000000e+00 : f32
    %229 = vector.shape_cast %228 : vector<16x1xf32> to vector<16x1xf32>
    %230 = vector.broadcast %229 : vector<16x1xf32> to vector<16x16xf32>
    %231 = vector.broadcast %cst_77 : f32 to vector<16x16xf32>
    %232 = arith.select %209, %230, %231 : vector<16x16xi1>, vector<16x16xf32>
    %233 = arith.addf %227, %232 : vector<16x16xf32>
    %234 = arith.truncf %233 : vector<16x16xf32> to vector<16x16xbf16>
    %c3_78 = arith.constant 3 : index
    %c0_79 = arith.constant 0 : index
    %c0_80 = arith.constant 0 : index
    %235 = vector.load %arg4[%c3_78, %c0_79, %c0_80] : memref<4x16x128xbf16, #tpu.memory_space<vmem>>, vector<1x16x128xbf16>
    %236 = vector.shape_cast %235 : vector<1x16x128xbf16> to vector<16x128xbf16>
    %cst_81 = arith.constant dense<0.000000e+00> : vector<16x128xf32>
    %237 = tpu.matmul %234, %236, %cst_81 {dimension_numbers = #tpu.dot_dimension_numbers<[1], [0], [0], [1], [0, 0, 1, 1], [], []>} : vector<16x16xbf16>, vector<16x128xbf16>, vector<16x128xf32> -> vector<16x128xf32>
    %238 = arith.addf %180, %237 : vector<16x128xf32>
    %c0_82 = arith.constant 0 : index
    %c0_83 = arith.constant 0 : index
    %239 = vector.load %arg7[%c0_82, %c0_83] : memref<16x128xf32, #tpu.memory_space<vmem>>, vector<16x128xf32>
    tpu.vector_store %arg7[%c0_82, %c0_83], %238 {strides = array<i32>} : memref<16x128xf32, #tpu.memory_space<vmem>>, vector<16x128xf32>,
    return
  }
  func.func @transform_0(%arg0: i32) -> (i32, i32) {
    %c0_i32 = arith.constant 0 : i32
    %c0_i32_0 = arith.constant 0 : i32
    return %arg0, %c0_i32 : i32, i32
  }
  func.func @transform_1(%arg0: i32) -> (i32, i32, i32) {
    %c0_i32 = arith.constant 0 : i32
    %c0_i32_0 = arith.constant 0 : i32
    %c0_i32_1 = arith.constant 0 : i32
    %c0_i32_2 = arith.constant 0 : i32
    return %c0_i32, %c0_i32_0, %c0_i32_1 : i32, i32, i32
  }
  func.func @transform_2(%arg0: i32) -> (i32, i32, i32) {
    %c0_i32 = arith.constant 0 : i32
    %c0_i32_0 = arith.constant 0 : i32
    %c0_i32_1 = arith.constant 0 : i32
    %c0_i32_2 = arith.constant 0 : i32
    return %c0_i32, %c0_i32_0, %c0_i32_1 : i32, i32, i32
  }
  func.func @transform_3(%arg0: i32) -> (i32, i32, i32) {
    %c0_i32 = arith.constant 0 : i32
    %c0_i32_0 = arith.constant 0 : i32
    %c0_i32_1 = arith.constant 0 : i32
    %c0_i32_2 = arith.constant 0 : i32
    return %c0_i32, %c0_i32_0, %c0_i32_1 : i32, i32, i32
  }
  func.func @transform_4(%arg0: i32) -> (i32, i32) {
    %c0_i32 = arith.constant 0 : i32
    %c0_i32_0 = arith.constant 0 : i32
    %c0_i32_1 = arith.constant 0 : i32
    return %c0_i32, %c0_i32_0 : i32, i32
  }
  func.func @transform_5(%arg0: i32) -> (i32, i32) {
    %c0_i32 = arith.constant 0 : i32
    %c0_i32_0 = arith.constant 0 : i32
    %c0_i32_1 = arith.constant 0 : i32
    return %c0_i32, %c0_i32_0 : i32, i32
  }
  func.func @transform_6(%arg0: i32) -> (i32, i32) {
    %c0_i32 = arith.constant 0 : i32
    %c0_i32_0 = arith.constant 0 : i32
    return %arg0, %c0_i32 : i32, i32
  }
}

</mosaic_0001>

<bundles_post_ra>
// kernel: tpu_custom_call.1
= control target key start
LH: loop header
LB: loop body
LE: loop exit
PB: predicated region body
PF: predicated region fallthrough
CT: control target
= control target key end

     0   :  { %s1188_s0 = inlined_call_operand.vmem [shape: bf16[16,32], index: 0, kind: input, shape index: {}]   ;;  %s1189_s1 = inlined_call_operand.vmem [shape: bf16[4,32,16], index: 1, kind: input, shape index: {}]   ;;  %s1190_s2 = inlined_call_operand.vmem [shape: f32[4,1,16], index: 2, kind: input, shape index: {}]   ;;  %s1191_s3 = inlined_call_operand.vmem [shape: bf16[4,16,128], index: 3, kind: input, shape index: {}]   ;;  %s1192_s4 = inlined_call_operand.vmem [shape: bf16[32,128], index: 4, kind: input, shape index: {}]   ;;  %s1193_s5 = inlined_call_operand.vmem [shape: f32[1,128], index: 5, kind: input, shape index: {}]   ;;  %s1194_s6 = inlined_call_operand.hbm [shape: f32[16,128], index: 6, kind: output, shape index: {}]  }
   0x1   :  { %v730_v0 = vld [vmem:[%s1192_s4 + $0x8] sm:$0xff]  ;;  %v735_v2 = vld [vmem:[%s1189_s1 + $0x18] sm:$0xff]  ;;  %v729_v3 = vld [vmem:[%s1192_s4] sm:$0xff] }
   0x2   :  { %v732_v1 = vld [vmem:[%s1189_s1 + $0x8] sm:$0xff]  ;;  %64 = vmatpush.bf16.msra.mxu0 %v730_v0  ;;  %v731_v4 = vld [vmem:[%s1189_s1] sm:$0xff]  ;;  %v734_v5 = vld [vmem:[%s1189_s1 + $0x10] sm:$0xff]  ;;  %235 = vmatpush.bf16.msra.mxu3 %v735_v2 }
   0x3   :  { %98 = vmatpush.bf16.msra.mxu1 %v732_v1  ;;  %v728_v6 = vld [vmem:[%s1188_s0] sm:$0xff]  ;;  %v738_v7 = vld [vmem:[%s1189_s1 + $0x28] sm:$0xff]  ;;  %v741_v8 = vld [vmem:[%s1189_s1 + $0x38] sm:$0xff] }
   0x4   :  { %11 = vsyncpa [#allocation3], 0  ;;  %vm54_vm0 = vcmask 261120   ;;  %v737_v9 = vld [vmem:[%s1189_s1 + $0x20] sm:$0xff]  ;;  %v740_v10 = vld [vmem:[%s1189_s1 + $0x30] sm:$0xff]  ;;  %vm106_vm1 = vcmask 130048   ;;  %v27_v41 = vlaneseq }
   0x5   :  { %v747_v11 = vld [vmem:[%s1190_s2] ss:$0 sm:$0xff]  ;;  %v748_v16 = vld [vmem:[%s1190_s2 + $0x1] ss:$0 sm:$0xff]  ;;  %v749_v24 = vld [vmem:[%s1190_s2 + $0x2] ss:$0 sm:$0xff] }
   0x6   :  { %65 = vmatpush.bf16.msra.mxu0 %v729_v3  ;;  %236 = vmatpush.bf16.msra.mxu3 %v734_v5  ;;  %v750_v31 = vld [vmem:[%s1190_s2 + $0x3] ss:$0 sm:$0xff]  ;;  %v926_v42 = vand.u32 127, %v27_v41  ;;  %s825_s8 = smov [#allocation2]   ;;  %s826_s12 = smov 128  }
   0x7   :  { %99 = vmatpush.bf16.msra.mxu1 %v731_v4  ;;  %s624_s9 = sshll.u32 %s825_s8, 4  ;;  %s827_s13 = smov 8   ;;  %s625_s9 = int_to_ptr.vmem [resolvable:$true] %s624_s9 }
   0x9   :  { %650 = vmatmul.msk.bf16.vlgmr.msra.gmra.mxu0 %vm54_vm0, %v728_v6  ;;  %678 = vmatmul.msk.bf16.vlgmr.msra.gmra.mxu3 %vm54_vm0, %v728_v6 }
   0xa   :  { %372 = vmatpush.bf16.msrb.mxu0 %v738_v7  ;;  %509 = vmatpush.bf16.msrb.mxu3 %v741_v8 }
   0xb   :  { %659 = vmatmul.msk.bf16.vlgmr.msra.gmra.mxu1 %vm54_vm0, %v728_v6 }
   0xe   :  { %373 = vmatpush.bf16.msrb.mxu0 %v737_v9  ;;  %510 = vmatpush.bf16.msrb.mxu3 %v740_v10 }
  0x19   :  { %699 = vmatmul.msk.bf16.vlgmr.msrb.gmra.mxu0 %vm54_vm0, %v728_v6  ;;  %720 = vmatmul.msk.bf16.vlgmr.msrb.gmra.mxu3 %vm54_vm0, %v728_v6 }
  0x86   :  { %v899_v12 = vpop.f32.mrf.mxu0 }
  0x88   :  { %v101_v13 = vpop.f32.mrf.mxu1 }
  0x89   :  { %v102_v14 = vadd.f32 %v747_v11, %v101_v13 }
  0x8b   :  { %v107_v15 = vsel %vm106_vm1, %v102_v14, -inf }
  0x8c   :  { %113 = vmax.index.xlane.f32.xlu0 %v107_v15  ;;  %v238_v17 = vpop.f32.mrf.mxu3 }
  0x8d   :  { %v239_v18 = vadd.f32 %v748_v16, %v238_v17 }
  0x8e   :  { %v905_v19 = vpop.f32.mrf.mxu0 }
  0x8f   :  { %v243_v22 = vsel %vm106_vm1, %v239_v18, -inf }
  0x90   :  { %v103_v20 = vpop.f32.mrf.mxu1  ;;  %249 = vmax.index.xlane.f32.xlu1 %v243_v22 }
  0x91   :  { %v104_v21 = vadd.f32 %v747_v11, %v103_v20 }
  0x93   :  { %v110_v23 = vsel %vm106_vm1, %v104_v21, -inf }
  0x94   :  { %115 = vmax.index.xlane.f32.xlu0 %v110_v23  ;;  %v240_v25 = vpop.f32.mrf.mxu3 }
  0x95   :  { %v241_v26 = vadd.f32 %v748_v16, %v240_v25 }
  0x96   :  { %v375_v27 = vpop.f32.mrf.mxu0 }
  0x97   :  { %v376_v28 = vadd.f32 %v749_v24, %v375_v27  ;;  %v246_v29 = vsel %vm106_vm1, %v241_v26, -inf }
  0x98   :  { %251 = vmax.index.xlane.f32.xlu1 %v246_v29 }
  0x99   :  { %v914_v30 = vsel %vm106_vm1, %v376_v28, -inf }
  0x9c   :  { %386 = vmax.index.xlane.f32.xlu0 %v914_v30  ;;  %v512_v32 = vpop.f32.mrf.mxu3 }
  0x9d   :  { %v513_v33 = vadd.f32 %v750_v31, %v512_v32 }
  0x9e   :  { %v377_v34 = vpop.f32.mrf.mxu0 }
  0x9f   :  { %v378_v35 = vadd.f32 %v749_v24, %v377_v34  ;;  %v517_v36 = vsel %vm106_vm1, %v513_v33, -inf }
  0xa0   :  { %523 = vmax.index.xlane.f32.xlu2 %v517_v36 }
  0xa1   :  { %v922_v37 = vsel %vm106_vm1, %v378_v35, -inf }
  0xa2   :  { %388 = vmax.index.xlane.f32.xlu1 %v922_v37 }
  0xa4   :  { %v514_v38 = vpop.f32.mrf.mxu3 }
  0xa5   :  { %v515_v39 = vadd.f32 %v750_v31, %v514_v38 }
  0xa7   :  { %v520_v40 = vsel %vm106_vm1, %v515_v39, -inf }
  0xa8   :  { %525 = vmax.index.xlane.f32.xlu2 %v520_v40 }
  0xaa   :  { %108 = vmax.xlane.f32.xlu1 %v107_v15 }
  0xb0   :  { %111 = vmax.xlane.f32.xlu2 %v110_v23 }
  0xff   :  { %v928_v43 = vpop.xlane.xlu0 %113 }
 0x100   :  { %vm117_vm2 = vcmp.eq.s32.totalorder %v926_v42, %v928_v43 }
 0x101   :  { %v119_v44 = vsel %vm117_vm2, -3.4028235e+38, %v102_v14 }
 0x102   :  { %v121_v45 = vsel %vm106_vm1, %v119_v44, -inf }
 0x103   :  { %127 = vmax.index.xlane.f32.xlu2 %v121_v45  ;;  %v936_v46 = vpop.xlane.xlu1 %249 }
 0x104   :  { %vm253_vm3 = vcmp.eq.s32.totalorder %v926_v42, %v936_v46 }
 0x105   :  { %v255_v48 = vsel %vm253_vm3, -3.4028235e+38, %v239_v18 }
 0x106   :  { %v257_v49 = vsel %vm106_vm1, %v255_v48, -inf }
 0x107   :  { %v940_v47 = vpop.xlane.xlu0 %115  ;;  %263 = vmax.index.xlane.f32.xlu1 %v257_v49 }
 0x108   :  { %vm118_vm4 = vcmp.eq.s32.totalorder %v926_v42, %v940_v47 }
 0x109   :  { %v120_v50 = vsel %vm118_vm4, -3.4028235e+38, %v104_v21 }
 0x10a   :  { %v124_v51 = vsel %vm106_vm1, %v120_v50, -inf }
 0x10b   :  { %247 = vmax.xlane.f32.xlu2 %v246_v29  ;;  %129 = vmax.index.xlane.f32.xlu0 %v124_v51  ;;  %v952_v52 = vpop.xlane.xlu1 %251 }
 0x10c   :  { %vm254_vm5 = vcmp.eq.s32.totalorder %v926_v42, %v952_v52 }
 0x10d   :  { %v256_v53 = vsel %vm254_vm5, -3.4028235e+38, %v241_v26 }
 0x10e   :  { %v260_v55 = vsel %vm106_vm1, %v256_v53, -inf }
 0x10f   :  { %v959_v54 = vpop.xlane.xlu0 %386  ;;  %244 = vmax.xlane.f32.xlu1 %v243_v22 }
 0x110   :  { %vm1197_vm6 = vcmp.eq.s32.totalorder %v926_v42, %v959_v54 }
 0x111   :  { %v392_v57 = vsel %vm1197_vm6, -3.4028235e+38, %v376_v28 }
 0x112   :  { %v394_v58 = vsel %vm106_vm1, %v392_v57, -inf }
 0x113   :  { %265 = vmax.index.xlane.f32.xlu2 %v260_v55  ;;  %122 = vmax.xlane.f32.xlu0 %v121_v45  ;;  %v964_v56 = vpop.xlane.xlu2 %523 }
 0x114   :  { %vm527_vm7 = vcmp.eq.s32.totalorder %v926_v42, %v964_v56 }
 0x115   :  { %v529_v60 = vsel %vm527_vm7, -3.4028235e+38, %v513_v33  ;;  %v982_v62 = vpop.xlane.xlu1 %388 }
 0x116   :  { %v531_v0 = vsel %vm106_vm1, %v529_v60, -inf  ;;  %vm1195_vm9 = vcmp.eq.s32.totalorder %v926_v42, %v982_v62 }
 0x117   :  { %125 = vmax.xlane.f32.xlu1 %v124_v51  ;;  %v393_v1 = vsel %vm1195_vm9, -3.4028235e+38, %v378_v35 }
 0x118   :  { %v397_v2 = vsel %vm106_vm1, %v393_v1, -inf }
 0x11b   :  { %258 = vmax.xlane.f32.xlu0 %v257_v49  ;;  %400 = vmax.index.xlane.f32.xlu2 %v394_v58  ;;  %v972_v59 = vpop.xlane.xlu2 %525 }
 0x11c   :  { %vm528_vm8 = vcmp.eq.s32.totalorder %v926_v42, %v972_v59 }
 0x11d   :  { %v530_v61 = vsel %vm528_vm8, -3.4028235e+38, %v515_v39  ;;  %v994_v4 = vpop.xlane.xlu1 %108 }
 0x11e   :  { %v534_v63 = vsel %vm106_vm1, %v530_v61, -inf }
 0x11f   :  { %539 = vmax.index.xlane.f32.xlu1 %v534_v63 }
 0x123   :  { %537 = vmax.index.xlane.f32.xlu0 %v531_v0  ;;  %532 = vmax.xlane.f32.xlu2 %v531_v0  ;;  %v992_v3 = vpop.xlane.xlu2 %111 }
 0x127   :  { %261 = vmax.xlane.f32.xlu1 %v260_v55 }
 0x12b   :  { %402 = vmax.index.xlane.f32.xlu0 %v397_v2 }
 0x12f   :  { %521 = vmax.xlane.f32.xlu1 %v520_v40 }
 0x133   :  { %518 = vmax.xlane.f32.xlu0 %v517_v36 }
 0x176   :  { %v996_v5 = vpop.xlane.xlu2 %127 }
 0x177   :  { %vm131_vm10 = vcmp.eq.s32.totalorder %v926_v42, %v996_v5 }
 0x178   :  { %v133_v6 = vsel %vm131_vm10, -3.4028235e+38, %v119_v44 }
 0x179   :  { %v135_v7 = vsel %vm106_vm1, %v133_v6, -inf }
 0x17a   :  { %141 = vmax.index.xlane.f32.xlu1 %v135_v7  ;;  %136 = vmax.xlane.f32.xlu2 %v135_v7  ;;  %v1004_v8 = vpop.xlane.xlu1 %263 }
 0x17b   :  { %vm267_vm11 = vcmp.eq.s32.totalorder %v926_v42, %v1004_v8 }
 0x17c   :  { %v269_v11 = vsel %vm267_vm11, -3.4028235e+38, %v255_v48 }
 0x17d   :  { %v271_v14 = vsel %vm106_vm1, %v269_v11, -inf }
 0x17e   :  { %v1008_v9 = vpop.xlane.xlu2 %247  ;;  %v1010_v10 = vpop.xlane.xlu0 %129 }
 0x17f   :  { %vm132_vm12 = vcmp.eq.s32.totalorder %v926_v42, %v1010_v10 }
 0x180   :  { %v134_v13 = vsel %vm132_vm12, -3.4028235e+38, %v120_v50  ;;  %v733_v50 = vld [vmem:[%s1191_s3] sm:$0xff] }
 0x181   :  { %v138_v15 = vsel %vm106_vm1, %v134_v13, -inf  ;;  %198 = vmatpush.bf16.msra.mxu2 %v733_v50 }
 0x182   :  { %384 = vmax.xlane.f32.xlu1 %v922_v37  ;;  %272 = vmax.xlane.f32.xlu2 %v271_v14  ;;  %v1023_v16 = vpop.xlane.xlu1 %244 }
 0x183   :  { %139 = vmax.xlane.f32.xlu0 %v138_v15 }
 0x186   :  { %v1025_v17 = vpop.xlane.xlu2 %265  ;;  %v123_v18 = vpop.xlane.xlu0 %122 }
 0x187   :  { %vm268_vm13 = vcmp.eq.s32.totalorder %v926_v42, %v1025_v17  ;;  %v147_v38 = vsub.f32 %v123_v18, %v994_v4 }
 0x188   :  { %v270_v23 = vsel %vm268_vm13, -3.4028235e+38, %v256_v53 }
 0x189   :  { %v274_v26 = vsel %vm106_vm1, %v270_v23, -inf  ;;  %v149_v39 = vmul.f32 1.442695, %v147_v38 }
 0x18a   :  { %143 = vmax.index.xlane.f32.xlu2 %v138_v15  ;;  %v126_v20 = vpop.xlane.xlu1 %125 }
 0x18b   :  { %535 = vmax.xlane.f32.xlu0 %v534_v63  ;;  %751 = vpow2.f32 %v149_v39  ;;  %v148_v48 = vsub.f32 %v126_v20, %v992_v3  ;;  %v736_v20 = vld [vmem:[%s1191_s3 + $0x8] sm:$0xff] }
 0x18c   :  { %335 = vmatpush.bf16.msrb.mxu2 %v736_v20 }
 0x18d   :  { %v151_v55 = vmul.f32 1.442695, %v148_v48 }
 0x18e   :  { %v1029_v21 = vpop.xlane.xlu2 %400  ;;  %v259_v22 = vpop.xlane.xlu0 %258 }
 0x18f   :  { %vm404_vm14 = vcmp.eq.s32.totalorder %v926_v42, %v1029_v21  ;;  %v283_v0 = vsub.f32 %v259_v22, %v1023_v16 }
 0x190   :  { %v406_v24 = vsel %vm404_vm14, -3.4028235e+38, %v392_v57 }
 0x191   :  { %v408_v25 = vsel %vm106_vm1, %v406_v24, -inf  ;;  %v752_v53 = vpop.eup %751  ;;  %v285_v7 = vmul.f32 1.442695, %v283_v0 }
 0x192   :  { %409 = vmax.xlane.f32.xlu1 %v408_v25  ;;  %395 = vmax.xlane.f32.xlu2 %v394_v58  ;;  %v1041_v27 = vpop.xlane.xlu1 %539 }
 0x193   :  { %275 = vmax.xlane.f32.xlu0 %v274_v26  ;;  %vm542_vm15 = vcmp.eq.s32.totalorder %v926_v42, %v1041_v27 }
 0x194   :  { %v544_v29 = vsel %vm542_vm15, -3.4028235e+38, %v530_v61 }
 0x195   :  { %v548_v32 = vsel %vm106_vm1, %v544_v29, -inf }
 0x196   :  { %v1045_v28 = vpop.xlane.xlu0 %537  ;;  %v533_v37 = vpop.xlane.xlu2 %532 }
 0x197   :  { %vm541_vm0 = vcmp.eq.s32.totalorder %v926_v42, %v1045_v28 }
 0x198   :  { %v543_v31 = vsel %vm541_vm0, -3.4028235e+38, %v529_v60  ;;  %v159_v60 = vadd.f32 1.0, %v752_v53 }
 0x199   :  { %v545_v33 = vsel %vm106_vm1, %v543_v31, -inf }
 0x19a   :  { %549 = vmax.xlane.f32.xlu2 %v548_v32  ;;  %546 = vmax.xlane.f32.xlu1 %v545_v33 }
 0x19b   :  { %381 = vmax.xlane.f32.xlu0 %v914_v30  ;;  %v262_v30 = vpop.xlane.xlu1 %261 }
 0x19e   :  { %v1058_v34 = vpop.xlane.xlu0 %402 }
 0x19f   :  { %vm1196_vm9 = vcmp.eq.s32.totalorder %v926_v42, %v1058_v34 }
 0x1a0   :  { %v407_v35 = vsel %vm1196_vm9, -3.4028235e+38, %v393_v1  ;;  %v284_v1 = vsub.f32 %v262_v30, %v1008_v9 }
 0x1a1   :  { %v411_v36 = vsel %vm106_vm1, %v407_v35, -inf }
 0x1a2   :  { %279 = vmax.index.xlane.f32.xlu1 %v274_v26  ;;  %412 = vmax.xlane.f32.xlu2 %v411_v36  ;;  %v287_v11 = vmul.f32 1.442695, %v284_v1 }
 0x1a3   :  { %398 = vmax.xlane.f32.xlu0 %v397_v2  ;;  %v1067_v40 = vpop.xlane.xlu1 %521 }
 0x1a6   :  { %v1069_v44 = vpop.xlane.xlu0 %518 }
 0x1aa   :  { %414 = vmax.index.xlane.f32.xlu1 %v408_v25  ;;  %551 = vmax.index.xlane.f32.xlu2 %v545_v33 }
 0x1ab   :  { %277 = vmax.index.xlane.f32.xlu0 %v271_v14 }
 0x1b2   :  { %416 = vmax.index.xlane.f32.xlu2 %v411_v36 }
 0x1b3   :  { %553 = vmax.index.xlane.f32.xlu0 %v548_v32 }
 0x1ed   :  { %v137_v41 = vpop.xlane.xlu2 %136  ;;  %v1076_v51 = vpop.xlane.xlu1 %141 }
 0x1ee   :  { %v153_v45 = vsub.f32 %v137_v41, %v994_v4  ;;  %vm145_vm9 = vcmp.eq.s32.totalorder %v926_v42, %v1076_v51  ;;  %v739_v51 = vld [vmem:[%s1191_s3 + $0x10] sm:$0xff] }
 0x1ef   :  { %472 = vmatpush.bf16.msrb.mxu1 %v739_v51 }
 0x1f0   :  { %v155_v49 = vmul.f32 1.442695, %v153_v45 }
 0x1f2   :  { %753 = vpow2.f32 %v155_v49 }
 0x1f3   :  { %755 = vpow2.f32 %v151_v55 }
 0x1f5   :  { %v273_v57 = vpop.xlane.xlu2 %272  ;;  %v1082_v13 = vpop.xlane.xlu1 %384 }
 0x1f6   :  { %v140_v58 = vpop.xlane.xlu0 %139  ;;  %v289_v6 = vsub.f32 %v273_v57, %v1023_v16  ;;  %v557_v16 = vsub.f32 %v533_v37, %v1069_v44 }
 0x1f7   :  { %v154_v61 = vsub.f32 %v140_v58, %v992_v3 }
 0x1f8   :  { %v754_v63 = vpop.eup %753  ;;  %v291_v18 = vmul.f32 1.442695, %v289_v6  ;;  %v559_v33 = vmul.f32 1.442695, %v557_v16 }
 0x1f9   :  { %v161_v2 = vadd.f32 %v754_v63, %v159_v60  ;;  %v157_v4 = vmul.f32 1.442695, %v154_v61  ;;  %v756_v15 = vpop.eup %755 }
 0x1fa   :  { %v160_v22 = vadd.f32 1.0, %v756_v15 }
 0x1fb   :  { %757 = vpow2.f32 %v157_v4 }
 0x1fc   :  { %759 = vrcp.f32 %v161_v2 }
 0x1fd   :  { %v144_v14 = vpop.xlane.xlu2 %143  ;;  %761 = vpow2.f32 %v285_v7 }
 0x1fe   :  { %v536_v3 = vpop.xlane.xlu0 %535  ;;  %763 = vpow2.f32 %v287_v11  ;;  %vm146_vm6 = vcmp.eq.s32.totalorder %v926_v42, %v144_v14 }
 0x1ff   :  { %765 = vpow2.f32 %v291_v18  ;;  %v558_v26 = vsub.f32 %v536_v3, %v1067_v40 }
 0x201   :  { %v758_v23 = vpop.eup %757  ;;  %v561_v41 = vmul.f32 1.442695, %v558_v26 }
 0x202   :  { %v760_v24 = vpop.eup %759  ;;  %v162_v25 = vadd.f32 %v758_v23, %v160_v22 }
 0x203   :  { %v1089_v32 = vpop.eup %761  ;;  %v167_v36 = vmul.f32 %v760_v24, %v752_v53  ;;  %v173_v55 = vmul.f32 %v760_v24, %v754_v63  ;;  %v165_v58 = vsel %vm117_vm2, %v760_v24, 0.0 }
 0x204   :  { %767 = vrcp.f32 %v162_v25  ;;  %v1091_v30 = vpop.eup %763  ;;  %v295_v37 = vadd.f32 1.0, %v1089_v32 }
 0x205   :  { %v410_v29 = vpop.xlane.xlu1 %409  ;;  %v396_v31 = vpop.xlane.xlu2 %395  ;;  %769 = vpow2.f32 %v559_v33  ;;  %v169_v48 = vsel %vm131_vm10, %v167_v36, 0.0  ;;  %v296_v50 = vadd.f32 1.0, %v1091_v30  ;;  %v175_v47 = vsel %vm145_vm9, %v173_v55, 0.0 }
 0x206   :  { %v276_v35 = vpop.xlane.xlu0 %275  ;;  %v1094_v39 = vpop.eup %765  ;;  %v171_v61 = vadd.f32 %v169_v48, %v165_v58 }
 0x207   :  { %v290_v38 = vsub.f32 %v276_v35, %v1008_v9  ;;  %v297_v53 = vadd.f32 %v1094_v39, %v295_v37 }
 0x209   :  { %v293_v45 = vmul.f32 1.442695, %v290_v38 }
 0x20a   :  { %v768_v49 = vpop.eup %767 }
 0x20b   :  { %771 = vpow2.f32 %v293_v45  ;;  %v168_v57 = vmul.f32 %v768_v49, %v756_v15  ;;  %v174_v9 = vmul.f32 %v768_v49, %v758_v23  ;;  %v166_v0 = vsel %vm118_vm4, %v768_v49, 0.0  ;;  %v1116_v11 = vpop.eup %769 }
 0x20c   :  { %773 = vpow2.f32 %v561_v41  ;;  %v569_v38 = vadd.f32 1.0, %v1116_v11 }
 0x20d   :  { %v550_v5 = vpop.xlane.xlu2 %549  ;;  %v547_v60 = vpop.xlane.xlu1 %546  ;;  %v170_v63 = vsel %vm132_vm12, %v168_v57, 0.0  ;;  %775 = vrcp.f32 %v297_v53  ;;  %v176_v14 = vsel %vm146_vm6, %v174_v9, 0.0  ;;  %vm1198_vm6 = vcmp.eq.s32.totalorder %v926_v42, %v959_v54 }
 0x20e   :  { %v564_v43 = vsub.f32 %v550_v5, %v1067_v40  ;;  %v563_v1 = vsub.f32 %v547_v60, %v1069_v44  ;;  %v382_v2 = vpop.xlane.xlu0 %381  ;;  %v172_v4 = vadd.f32 %v170_v63, %v166_v0  ;;  %v177_v40 = vadd.f32 %v175_v47, %v171_v61  ;;  %v742_v44 = vld [vmem:[%s1191_s3 + $0x18] sm:$0xff] }
 0x20f   :  { %v420_v6 = vsub.f32 %v396_v31, %v382_v2  ;;  %v426_v7 = vsub.f32 %v410_v29, %v382_v2 }
 0x210   :  { %v567_v15 = vmul.f32 1.442695, %v564_v43  ;;  %v565_v18 = vmul.f32 1.442695, %v563_v1  ;;  %v178_v3 = vadd.f32 %v176_v14, %v172_v4 }
 0x211   :  { %v772_v10 = vpop.eup %771  ;;  %v422_v20 = vmul.f32 1.442695, %v420_v6  ;;  %v428_v16 = vmul.f32 1.442695, %v426_v7 }
 0x212   :  { %v298_v22 = vadd.f32 %v772_v10, %v296_v50  ;;  %777 = vpow2.f32 %v567_v15  ;;  %v774_v23 = vpop.eup %773  ;;  %v179_v24 = vpack.c.bf16 %v178_v3, %v177_v40 }
 0x213   :  { %779 = vpow2.f32 %v565_v18  ;;  %v776_v25 = vpop.eup %775  ;;  %v570_v31 = vadd.f32 1.0, %v774_v23 }
 0x214   :  { %781 = vrcp.f32 %v298_v22  ;;  %664 = vmatmul.msk.bf16.vlgmr.msra.gmra.mxu2 %vm106_vm1, %v179_v24  ;;  %v303_v37 = vmul.f32 %v776_v25, %v1089_v32  ;;  %v309_v8 = vmul.f32 %v776_v25, %v1094_v39 }
 0x215   :  { %783 = vpow2.f32 %v422_v20  ;;  %v413_v26 = vpop.xlane.xlu2 %412  ;;  %609 = vmatpush.bf16.msra.mxu2 %v742_v44  ;;  %v280_v55 = vpop.xlane.xlu1 %279 }
 0x216   :  { %v399_v29 = vpop.xlane.xlu0 %398  ;;  %785 = vpow2.f32 %v428_v16  ;;  %v427_v33 = vsub.f32 %v413_v26, %v1082_v13  ;;  %vm282_vm2 = vcmp.eq.s32.totalorder %v926_v42, %v280_v55 }
 0x217   :  { %v421_v35 = vsub.f32 %v399_v29, %v1082_v13  ;;  %v305_v13 = vsel %vm267_vm11, %v303_v37, 0.0 }
 0x218   :  { %v778_v36 = vpop.eup %777  ;;  %v430_v58 = vmul.f32 1.442695, %v427_v33 }
 0x219   :  { %v780_v41 = vpop.eup %779  ;;  %v572_v45 = vadd.f32 %v778_v36, %v570_v31  ;;  %v424_v48 = vmul.f32 1.442695, %v421_v35 }
 0x21a   :  { %v782_v49 = vpop.eup %781  ;;  %v571_v50 = vadd.f32 %v780_v41, %v569_v38 }
 0x21b   :  { %v784_v53 = vpop.eup %783  ;;  %787 = vrcp.f32 %v572_v45  ;;  %v304_v57 = vmul.f32 %v782_v49, %v1091_v30  ;;  %v310_v9 = vmul.f32 %v782_v49, %v772_v10  ;;  %v302_v32 = vsel %vm254_vm5, %v782_v49, 0.0 }
 0x21c   :  { %789 = vrcp.f32 %v571_v50  ;;  %v432_v5 = vadd.f32 1.0, %v784_v53  ;;  %v786_v60 = vpop.eup %785  ;;  %v301_v30 = vsel %vm253_vm3, %v776_v25, 0.0 }
 0x21d   :  { %v306_v61 = vsel %vm268_vm13, %v304_v57, 0.0  ;;  %791 = vpow2.f32 %v424_v48  ;;  %v312_v1 = vsel %vm282_vm2, %v310_v9, 0.0  ;;  %v307_v52 = vadd.f32 %v305_v13, %v301_v30  ;;  %v552_v39 = vpop.xlane.xlu2 %551  ;;  %v415_v35 = vpop.xlane.xlu1 %414 }
 0x21e   :  { %v434_v0 = vadd.f32 %v786_v60, %v432_v5  ;;  %v308_v63 = vadd.f32 %v306_v61, %v302_v32  ;;  %v278_v43 = vpop.xlane.xlu0 %277  ;;  %793 = vpow2.f32 %v430_v58  ;;  %vm555_vm5 = vcmp.eq.s32.totalorder %v926_v42, %v552_v39 }
 0x21f   :  { %vm281_vm4 = vcmp.eq.s32.totalorder %v926_v42, %v278_v43  ;;  %vm418_vm9 = vcmp.eq.s32.totalorder %v926_v42, %v415_v35 }
 0x220   :  { %795 = vrcp.f32 %v434_v0  ;;  %v314_v17 = vadd.f32 %v312_v1, %v308_v63  ;;  %v311_v2 = vsel %vm281_vm4, %v309_v8, 0.0 }
 0x221   :  { %v788_v4 = vpop.eup %787  ;;  %v313_v6 = vadd.f32 %v311_v2, %v307_v52 }
 0x222   :  { %v790_v7 = vpop.eup %789  ;;  %v578_v47 = vmul.f32 %v788_v4, %v774_v23  ;;  %v576_v24 = vsel %vm528_vm8, %v788_v4, 0.0  ;;  %v584_v51 = vmul.f32 %v788_v4, %v778_v36  ;;  %vm1200_vm8 = vcmp.eq.s32.totalorder %v926_v42, %v1058_v34  ;;  %v746_v34 = vld [vmem:[%s1193_s5] ss:$0 sm:$0xff]  ;;  %s626_s5 = sshll.u32 %s1194_s6, 4  ;;  %s627_s5 = int_to_ptr.hbm [resolvable:$true] %s626_s5 }
 0x223   :  { %v792_v46 = vpop.eup %791  ;;  %v315_v14 = vpack.c.bf16 %v314_v17, %v313_v6  ;;  %v577_v18 = vmul.f32 %v790_v7, %v1116_v11  ;;  %v575_v11 = vsel %vm527_vm7, %v790_v7, 0.0  ;;  %v583_v23 = vmul.f32 %v790_v7, %v780_v41 }
 0x224   :  { %v433_v15 = vadd.f32 1.0, %v792_v46  ;;  %v794_v10 = vpop.eup %793  ;;  %v580_v44 = vsel %vm542_vm15, %v578_v47, 0.0  ;;  %vm1199_vm7 = vcmp.eq.s32.totalorder %v926_v42, %v982_v62  ;;  %v70_v63 = vadd.f32 %v746_v34, %v905_v19 }
 0x225   :  { %685 = vmatmul.msk.bf16.vlgmr.msrb.gmra.mxu2 %vm106_vm1, %v315_v14  ;;  %v579_v22 = vsel %vm541_vm0, %v577_v18, 0.0  ;;  %v582_v28 = vadd.f32 %v580_v44, %v576_v24  ;;  %v585_v33 = vsel %vm555_vm5, %v583_v23, 0.0  ;;  %v417_v38 = vpop.xlane.xlu2 %416 }
 0x226   :  { %v796_v3 = vpop.eup %795  ;;  %v435_v20 = vadd.f32 %v794_v10, %v433_v15  ;;  %v554_v40 = vpop.xlane.xlu0 %553  ;;  %v581_v25 = vadd.f32 %v579_v22, %v575_v11  ;;  %vm419_vm10 = vcmp.eq.s32.totalorder %v926_v42, %v417_v38 }
 0x227   :  { %v440_v16 = vmul.f32 %v796_v3, %v784_v53  ;;  %vm556_vm3 = vcmp.eq.s32.totalorder %v926_v42, %v554_v40  ;;  %v438_v56 = vsel %vm1198_vm6, %v796_v3, 0.0  ;;  %v446_v31 = vmul.f32 %v796_v3, %v786_v60 }
 0x228   :  { %797 = vrcp.f32 %v435_v20  ;;  %v586_v26 = vsel %vm556_vm3, %v584_v51, 0.0  ;;  %v587_v59 = vadd.f32 %v585_v33, %v581_v25  ;;  %v68_v42 = vadd.f32 %v746_v34, %v899_v12 }
 0x229   :  { %v442_v27 = vsel %vm404_vm14, %v440_v16, 0.0  ;;  %v588_v41 = vadd.f32 %v586_v26, %v582_v28  ;;  %v448_v49 = vsel %vm418_vm9, %v446_v31, 0.0 }
 0x22a   :  { %v444_v45 = vadd.f32 %v442_v27, %v438_v56 }
 0x22b   :  { %v589_v53 = vpack.c.bf16 %v588_v41, %v587_v59 }
 0x22c   :  { %v450_v55 = vadd.f32 %v448_v49, %v444_v45 }
 0x22e   :  { %v798_v29 = vpop.eup %797 }
 0x22f   :  { %v441_v36 = vmul.f32 %v798_v29, %v792_v46  ;;  %v447_v37 = vmul.f32 %v798_v29, %v794_v10  ;;  %v439_v21 = vsel %vm1199_vm7, %v798_v29, 0.0 }
 0x231   :  { %v443_v48 = vsel %vm1200_vm8, %v441_v36, 0.0  ;;  %v449_v50 = vsel %vm419_vm10, %v447_v37, 0.0 }
 0x232   :  { %v445_v54 = vadd.f32 %v443_v48, %v439_v21 }
 0x234   :  { %v451_v57 = vadd.f32 %v449_v50, %v445_v54 }
 0x235   :  { %727 = vmatmul.msk.bf16.vlgmr.msra.gmra.mxu2 %vm106_vm1, %v589_v53 }
 0x236   :  { %v452_v9 = vpack.c.bf16 %v451_v57, %v450_v55 }
 0x238   :  { %706 = vmatmul.msk.bf16.vlgmr.msrb.gmra.mxu1 %vm106_vm1, %v452_v9 }
 0x297   :  { %v200_v62 = vpop.f32.mrf.mxu2 }
 0x298   :  { %v205_v60 = vadd.f32 %v200_v62, %v68_v42 }
 0x29f   :  { %v202_v58 = vpop.f32.mrf.mxu2 }
 0x2a0   :  { %v206_v43 = vadd.f32 %v202_v58, %v70_v63 }
 0x2a8   :  { %v337_v5 = vpop.f32.mrf.mxu2 }
 0x2a9   :  { %v342_v32 = vadd.f32 %v337_v5, %v205_v60 }
 0x2b0   :  { %v339_v13 = vpop.f32.mrf.mxu2 }
 0x2b1   :  { %v343_v1 = vadd.f32 %v339_v13, %v206_v43 }
 0x2b5   :  { %v474_v61 = vpop.f32.mrf.mxu1 }
 0x2b6   :  { %v479_v30 = vadd.f32 %v474_v61, %v342_v32 }
 0x2b8   :  { %v611_v0 = vpop.f32.mrf.mxu2 }
 0x2b9   :  { %v616_v8 = vadd.f32 %v611_v0, %v479_v30 }
 0x2bb   :  { %618 = vst [vmem:[#allocation2] sm:$0xff] %v616_v8 }
 0x2bd   :  { %v476_v52 = vpop.f32.mrf.mxu1 }
 0x2be   :  { %v480_v17 = vadd.f32 %v476_v52, %v343_v1 }
 0x2c0   :  { %v613_v12 = vpop.f32.mrf.mxu2 }
 0x2c1   :  { %v617_v2 = vadd.f32 %v613_v12, %v480_v17 }
 0x2c3   :  { %619 = vst [vmem:[#allocation2 + $0x8] sm:$0xff] %v617_v2 }
 0x2c4   :  { %632 = dma.vmem_to_hbm [thread:$0]  %s625_s9, 256, %s627_s5, [#allocation3], %s826_s12, %s826_s12, %s827_s13  }
 0x2c5   :  { %823 = dma.done.wait [#allocation3], 256  }
 0x2c6   :  { %824 = vsyncadd [#allocation3], 4294967040 }
 0x2c7   :  { %637 = vsyncpa [#allocation3], 1 }

</bundles_post_ra>
